<compile_context>
chip_gen: v7x
topology: tpu7x:2x2x1
jax: 0.10.0
libtpu: 0.0.40
codegen_flags: <defaults>
</compile_context>

<pallas_src>
import functools

import numpy as np
import jax
import jax.numpy as jnp
from jax.experimental import pallas as pl
from jax.experimental.pallas import tpu as pltpu

HIDDEN = 256      # fc1 output size (matches nn.Linear(state_size, 256))
K_PAD = 128       # padded state feature dim (lane-aligned LHS)
N_PAD = 128       # padded action dim (lane-dense output)
TB = 128          # batch tile


def _round_up(x, m):
    return ((x + m - 1) // m) * m


def policy_kernel(x_ref, w1_ref, b1_ref, w2_ref, b2_ref, o_ref):
    # fc1: (TB, K_PAD)bf16 @ (K_PAD, H)bf16 -> f32 acc, bias + ReLU in f32.
    h = jnp.dot(x_ref[...], w1_ref[...], preferred_element_type=jnp.float32)
    h = jnp.maximum(h + b1_ref[...], 0.0)
    # fc2: (TB, H)bf16 @ (H, N_PAD)bf16 -> f32 acc, bias + tanh in f32.
    y = jnp.dot(h.astype(jnp.bfloat16), w2_ref[...],
                preferred_element_type=jnp.float32)
    y = y + b2_ref[...]
    o_ref[...] = jnp.tanh(y).astype(o_ref.dtype)


def prepare_params(w1, b1, w2, b2):
    """One-time padding/casting of parameters into the kernel layout.

    w1: (S, H) f32   -> (K_PAD, H) bf16  (zero rows beyond S)
    b1: (1, H) f32   -> (1, H)     f32
    w2: (H, A) f32   -> (H, N_PAD) bf16  (zero cols beyond A)
    b2: (1, A) f32   -> (1, N_PAD) f32   (zero cols beyond A)
    """
    S, H = w1.shape
    A = w2.shape[1]
    assert H == HIDDEN and S <= K_PAD and A <= N_PAD
    w1_p = jnp.zeros((K_PAD, H), jnp.bfloat16).at[:S, :].set(
        w1.astype(jnp.bfloat16))
    w2_p = jnp.zeros((H, N_PAD), jnp.bfloat16).at[:, :A].set(
        w2.astype(jnp.bfloat16))
    b2_p = jnp.zeros((1, N_PAD), jnp.float32).at[:, :A].set(b2)
    return dict(w1=w1_p, b1=b1.astype(jnp.float32), w2=w2_p, b2=b2_p,
                state_size=S, action_size=A)


@functools.partial(jax.jit, static_argnames=("block_b",))
def _policy_forward_padded(state_p, w1_p, b1, w2_p, b2_p, block_b=TB):
    B_pad = state_p.shape[0]
    grid = (B_pad // block_b,)
    return pl.pallas_call(
        policy_kernel,
        out_shape=jax.ShapeDtypeStruct((B_pad, N_PAD), jnp.float32),
        grid=grid,
        in_specs=[
            pl.BlockSpec((block_b, K_PAD), lambda i: (i, 0)),   # state tile
            pl.BlockSpec((K_PAD, HIDDEN), lambda i: (0, 0)),    # w1 resident
            pl.BlockSpec((1, HIDDEN),     lambda i: (0, 0)),    # b1 resident
            pl.BlockSpec((HIDDEN, N_PAD), lambda i: (0, 0)),    # w2 resident
            pl.BlockSpec((1, N_PAD),      lambda i: (0, 0)),    # b2 resident
        ],
        out_specs=pl.BlockSpec((block_b, N_PAD), lambda i: (i, 0)),
        compiler_params=pltpu.CompilerParams(
            dimension_semantics=("parallel",)),
    )(state_p, w1_p, b1, w2_p, b2_p)


def policy_forward(state, params):
    """state: (B, state_size) f32; returns (B, action_size) f32."""
    B, S = state.shape
    assert S == params["state_size"]
    A = params["action_size"]
    B_pad = _round_up(max(B, 1), TB)
    # Pad the batch to a tile multiple and the feature dim to K_PAD (zeros),
    # casting the MXU LHS to bf16. Cheap relative to the kernel at large B.
    state_p = jnp.zeros((B_pad, K_PAD), jnp.bfloat16)
    state_p = state_p.at[:B, :S].set(state.astype(jnp.bfloat16))
    out_p = _policy_forward_padded(
        state_p, params["w1"], params["b1"], params["w2"], params["b2"])
    return out_p[:B, :A]


def init_params(key, state_size, action_size, hidden=HIDDEN):
    """Deterministic init mirroring PolicyNetwork.reset_parameters ranges."""
    k1, k2, k3, k4 = jax.random.split(key, 4)
    # fc1.weight ~ U(-1/sqrt(256), 1/sqrt(256))  (fan_init = out_features)
    lim1 = 1.0 / np.sqrt(hidden)
    w1 = jax.random.uniform(k1, (state_size, hidden), jnp.float32, -lim1, lim1)
    # fc1.bias keeps PyTorch default: U(-1/sqrt(in_features), 1/sqrt(in_features))
    blim1 = 1.0 / np.sqrt(state_size)
    b1 = jax.random.uniform(k2, (1, hidden), jnp.float32, -blim1, blim1)
    # fc2.weight ~ U(-3e-3, 3e-3)
    w2 = jax.random.uniform(k3, (hidden, action_size), jnp.float32, -3e-3, 3e-3)
    # fc2.bias keeps PyTorch default: U(-1/sqrt(256), 1/sqrt(256))
    blim2 = 1.0 / np.sqrt(hidden)
    b2 = jax.random.uniform(k4, (1, action_size), jnp.float32, -blim2, blim2)
    return w1, b1, w2, b2


if __name__ == "__main__":
    key = jax.random.PRNGKey(0)
    k_state, k_params = jax.random.split(key)

    batch = 200          # not a tile multiple, exercises batch padding
    state_size = 24      # BipedalWalker observation dim
    action_size = 4      # BipedalWalker action dim

    state = jax.random.normal(k_state, (batch, state_size), dtype=jnp.float32)
    w1, b1, w2, b2 = init_params(k_params, state_size, action_size)
    params = prepare_params(w1, b1, w2, b2)

    out = policy_forward(state, params)
    jax.block_until_ready(out)
    assert out.shape == (batch, action_size)

    # Reference 1: same numerics as the kernel (bf16 MXU operands, f32 acc).
    h_ref = jnp.dot(state.astype(jnp.bfloat16), w1.astype(jnp.bfloat16),
                    preferred_element_type=jnp.float32)
    h_ref = jnp.maximum(h_ref + b1, 0.0)
    y_ref = jnp.dot(h_ref.astype(jnp.bfloat16), w2.astype(jnp.bfloat16),
                    preferred_element_type=jnp.float32) + b2
    ref_matched = jnp.tanh(y_ref)
    np.testing.assert_allclose(np.asarray(out), np.asarray(ref_matched),
                               rtol=1e-3, atol=1e-4)

    # Reference 2: full-f32 semantics check (loose, accounts for bf16 inputs).
    ref_f32 = jnp.tanh(jnp.maximum(state @ w1 + b1, 0.0) @ w2 + b2)
    np.testing.assert_allclose(np.asarray(out), np.asarray(ref_f32),
                               rtol=5e-2, atol=5e-3)

    print("KERNEL_OK")
</pallas_src>

<mosaic_0001>
module attributes {stable_mosaic.version = 11 : i64} {
  func.func @policy_kernel(%arg0: i32, %arg1: memref<128x128xbf16, #tpu.memory_space<vmem>>, %arg2: memref<128x256xbf16, #tpu.memory_space<vmem>>, %arg3: memref<1x256xf32, #tpu.memory_space<vmem>>, %arg4: memref<256x128xbf16, #tpu.memory_space<vmem>>, %arg5: memref<1x128xf32, #tpu.memory_space<vmem>>, %arg6: memref<128x128xf32, #tpu.memory_space<vmem>>) attributes {dimension_semantics = [#tpu.dimension_semantics<parallel>], iteration_bounds = array<i64: 2>, scalar_prefetch = 0 : i64, scratch_operands = 0 : i64, tpu.core_type = #tpu.core_type<tc>, window_params = [{transform_indices = @transform_0, window_bounds = array<i64: 128, 128>}, {pipeline_mode = #tpu.pipeline_mode<synchronous>, transform_indices = @transform_1, window_bounds = array<i64: 128, 256>}, {pipeline_mode = #tpu.pipeline_mode<synchronous>, transform_indices = @transform_2, window_bounds = array<i64: 1, 256>}, {pipeline_mode = #tpu.pipeline_mode<synchronous>, transform_indices = @transform_3, window_bounds = array<i64: 256, 128>}, {pipeline_mode = #tpu.pipeline_mode<synchronous>, transform_indices = @transform_4, window_bounds = array<i64: 1, 128>}, {transform_indices = @transform_5, window_bounds = array<i64: 128, 128>}]} {
    %c0 = arith.constant 0 : index
    %c0_0 = arith.constant 0 : index
    %0 = vector.load %arg1[%c0, %c0_0] : memref<128x128xbf16, #tpu.memory_space<vmem>>, vector<128x128xbf16>
    %c0_1 = arith.constant 0 : index
    %c0_2 = arith.constant 0 : index
    %1 = vector.load %arg2[%c0_1, %c0_2] : memref<128x256xbf16, #tpu.memory_space<vmem>>, vector<128x256xbf16>
    %cst = arith.constant dense<0.000000e+00> : vector<128x256xf32>
    %2 = tpu.matmul %0, %1, %cst {dimension_numbers = #tpu.dot_dimension_numbers<[1], [0], [0], [1], [0, 0, 1, 1], [], []>} : vector<128x128xbf16>, vector<128x256xbf16>, vector<128x256xf32> -> vector<128x256xf32>
    %c0_3 = arith.constant 0 : index
    %c0_4 = arith.constant 0 : index
    %3 = vector.load %arg3[%c0_3, %c0_4] : memref<1x256xf32, #tpu.memory_space<vmem>>, vector<1x256xf32>
    %4 = vector.broadcast %3 : vector<1x256xf32> to vector<128x256xf32>
    %5 = arith.addf %2, %4 : vector<128x256xf32>
    %cst_5 = arith.constant 0.000000e+00 : f32
    %6 = vector.broadcast %cst_5 : f32 to vector<128x256xf32>
    %7 = arith.maximumf %5, %6 : vector<128x256xf32>
    %8 = arith.truncf %7 : vector<128x256xf32> to vector<128x256xbf16>
    %c0_6 = arith.constant 0 : index
    %c0_7 = arith.constant 0 : index
    %9 = vector.load %arg4[%c0_6, %c0_7] : memref<256x128xbf16, #tpu.memory_space<vmem>>, vector<256x128xbf16>
    %cst_8 = arith.constant dense<0.000000e+00> : vector<128x128xf32>
    %10 = tpu.matmul %8, %9, %cst_8 {dimension_numbers = #tpu.dot_dimension_numbers<[1], [0], [0], [1], [0, 0, 1, 1], [], []>} : vector<128x256xbf16>, vector<256x128xbf16>, vector<128x128xf32> -> vector<128x128xf32>
    %c0_9 = arith.constant 0 : index
    %c0_10 = arith.constant 0 : index
    %11 = vector.load %arg5[%c0_9, %c0_10] : memref<1x128xf32, #tpu.memory_space<vmem>>, vector<1x128xf32>
    %12 = vector.broadcast %11 : vector<1x128xf32> to vector<128x128xf32>
    %13 = arith.addf %10, %12 : vector<128x128xf32>
    %14 = math.tanh %13 : vector<128x128xf32>
    %c0_11 = arith.constant 0 : index
    %c0_12 = arith.constant 0 : index
    %15 = vector.load %arg6[%c0_11, %c0_12] : memref<128x128xf32, #tpu.memory_space<vmem>>, vector<128x128xf32>
    tpu.vector_store %arg6[%c0_11, %c0_12], %14 {strides = array<i32>} : memref<128x128xf32, #tpu.memory_space<vmem>>, vector<128x128xf32>,
    return
  }
  func.func @transform_0(%arg0: i32) -> (i32, i32) {
    %c0_i32 = arith.constant 0 : i32
    %c0_i32_0 = arith.constant 0 : i32
    return %arg0, %c0_i32 : i32, i32
  }
  func.func @transform_1(%arg0: i32) -> (i32, i32) {
    %c0_i32 = arith.constant 0 : i32
    %c0_i32_0 = arith.constant 0 : i32
    %c0_i32_1 = arith.constant 0 : i32
    return %c0_i32, %c0_i32_0 : i32, i32
  }
  func.func @transform_2(%arg0: i32) -> (i32, i32) {
    %c0_i32 = arith.constant 0 : i32
    %c0_i32_0 = arith.constant 0 : i32
    %c0_i32_1 = arith.constant 0 : i32
    return %c0_i32, %c0_i32_0 : i32, i32
  }
  func.func @transform_3(%arg0: i32) -> (i32, i32) {
    %c0_i32 = arith.constant 0 : i32
    %c0_i32_0 = arith.constant 0 : i32
    %c0_i32_1 = arith.constant 0 : i32
    return %c0_i32, %c0_i32_0 : i32, i32
  }
  func.func @transform_4(%arg0: i32) -> (i32, i32) {
    %c0_i32 = arith.constant 0 : i32
    %c0_i32_0 = arith.constant 0 : i32
    %c0_i32_1 = arith.constant 0 : i32
    return %c0_i32, %c0_i32_0 : i32, i32
  }
  func.func @transform_5(%arg0: i32) -> (i32, i32) {
    %c0_i32 = arith.constant 0 : i32
    %c0_i32_0 = arith.constant 0 : i32
    return %arg0, %c0_i32 : i32, i32
  }
}

</mosaic_0001>

<bundles_post_ra>
// kernel: _policy_forward_padded.1
= control target key start
LH: loop header
LB: loop body
LE: loop exit
PB: predicated region body
PF: predicated region fallthrough
CT: control target
= control target key end

     0   :  { %10 = vsyncpa [#allocation3], 0  ;;  %s1794_s0 = inlined_call_operand.hbm [shape: bf16[256,128], index: 0, kind: input, shape index: {}]   ;;  %s1795_s1 = inlined_call_operand.hbm [shape: bf16[128,256], index: 1, kind: input, shape index: {}]   ;;  %s1796_s2 = inlined_call_operand.vmem [shape: f32[1,256], index: 2, kind: input, shape index: {}]   ;;  %s1797_s3 = inlined_call_operand.hbm [shape: bf16[256,128], index: 3, kind: input, shape index: {}]   ;;  %s1798_s4 = inlined_call_operand.vmem [shape: f32[1,128], index: 4, kind: input, shape index: {}]   ;;  %s1799_s5 = inlined_call_operand.hbm [shape: f32[256,128], index: 5, kind: output, shape index: {}]  }
   0x1   :  { %12 = vsyncpa [#allocation3 + $0x1], 0 }
   0x2   :  { %13 = vsyncpa [#allocation6], 0 }
   0x3   :  { %14 = vsyncpa [#allocation4], 0 }
   0x4   :  { %16 = vsyncpa [#allocation4 + $0x1], 0  ;;  %s1456_s18 = smov 0   ;;  %s1458_s19 = smov 0  }
   0x5   :  { %s1460_s20 = smov 0   ;;  %s1462_s21 = smov 0  }
   0x6 LB: > { %s1477_s22 = sadd.s32 4294967295, %s1413_s21   ;;  %s978_s23 = sadd.s32 4294967294, %s1413_s21   ;;  %s1413_s21 = sphi %s1462_s21, %s1819_s21   ;;  %s1409_s20 = sphi %s1460_s20, %s1818_s20   ;;  %s1405_s19 = sphi %s1458_s19, %s1817_s19   ;;  %s1401_s18 = sphi %s1456_s18, %s1816_s18  }
   0x7   : > { %p42_p0 = scmp.ne.s32.totalorder %s1405_s19, %s1401_s18  ;;  %p1800_p1 = scmp.eq.s32.totalorder %s1477_s22, 0 }
   0x8   : > { %p156_p3 = scmp.eq.s32.totalorder %s978_s23, 1  ;;  %p979_p5 = scmp.ge.s32.totalorder %s1413_s21, 1 }
   0x9   : > { %p1486_p4 = por %p1800_p1, %p42_p0  ;;  %p163_p7 = scmp.lt.s32.totalorder %s1413_s21, 3 }
   0xa   : > { %p1491_p6 = por %p156_p3, %p42_p0  ;;  %s1415_s27 = smov [#allocation5]  }
   0xb   : > { %s1803_s24 = scalar_select %p1486_p4, 1, 0 }
   0xc   : > { %s1804_s25 = scalar_select %p1491_p6, 1, 0 }
   0xd   : > { %p1496_p8 = pnand %p979_p5, %p163_p7  ;;  %s175_s28 = sshll.u32 %s1415_s27, 4  ;;  %s1500_s28 = int_to_ptr.vmem [resolvable:$true] %s175_s28 }
   0xe   : > { %s1416_s30 = smov [#allocation7]   ;;  %s1257_s9 = scalar_lea.hbm %s1795_s1, 2048 }
   0xf   : > { %p1115_p9 = pneg %p1496_p8  ;;  %s191_s6 = sshll.u32 %s1416_s30, 4  ;;  %s1511_s6 = int_to_ptr.vmem [resolvable:$true] %s191_s6 }
  0x10   : > { %p1258_p12 = scmp.ne.s32.totalorder %s1795_s1, %s1257_s9  ;;  %p1264_p5 = scmp.lt.u32.totalorder %s1257_s9, %s1795_s1 }
  0x11   : > { %p1507_p11 = pnand %p1115_p9, %p1800_p1 }
  0x13   : > { %p1259_p13 = pneg %p1507_p11 }
  0x15   : > { %p1260_p0 = pnand %p1259_p13, %p1258_p12 }
  0x17   : > { %p1261_p3 = pneg %p1260_p0 }
  0x19   : > { %p1266_p7 = pnand %p1264_p5, %p1261_p3 }
  0x1b   : > { %1269 = shalt.err (!%p1266_p7)
}
  0x1c   : > { %s1270_s14 = scalar_lea.vmem %s1500_s28, 2048  ;;  %p1278_p2 = scmp.lt.s32.totalorder %s1500_s28, %s1500_s28 }
  0x1d   : > { %p1271_p9 = scmp.ne.s32.totalorder %s1500_s28, %s1270_s14  ;;  %p1279_p12 = scmp.lt.s32.totalorder %s1270_s14, %s1270_s14 }
  0x1f   : > { %p1273_p10 = pnand %p1271_p9, %p1259_p13  ;;  %p1280_p0 = por %p1279_p12, %p1278_p2 }
  0x21   : > { %p1274_p1 = pneg %p1273_p10 }
  0x23   : > { %p1281_p6 = pnand %p1280_p0, %p1274_p1 }
  0x25   : > { %1284 = shalt.err (!%p1281_p6)
}
  0x26   : > { %s1417_s15 = smov 128   ;;  %s1418_s16 = smov 8  }
  0x27   : > { %1118 = dma.hbm_to_vmem [thread:$0]  (!%p1507_p11), %s1795_s1, 2048, %s1500_s28, [#allocation6], %s1417_s15, %s1417_s15, %s1418_s16  }
  0x28   : > { %s1285_s7 = scalar_lea.hbm %s1797_s3, 2048 }
  0x29   : > { %p1286_p2 = scmp.ne.s32.totalorder %s1797_s3, %s1285_s7  ;;  %p1292_p10 = scmp.lt.u32.totalorder %s1285_s7, %s1797_s3 }
  0x2b   : > { %p1288_p1 = pnand %p1286_p2, %p1259_p13 }
  0x2d   : > { %p1289_p6 = pneg %p1288_p1 }
  0x2f   : > { %p1294_p3 = pnand %p1292_p10, %p1289_p6 }
  0x31   : > { %1297 = shalt.err (!%p1294_p3)
}
  0x32   : > { %s1298_s28 = scalar_lea.vmem %s1511_s6, 2048  ;;  %p1306_p12 = scmp.lt.s32.totalorder %s1511_s6, %s1511_s6 }
  0x33   : > { %p1299_p5 = scmp.ne.s32.totalorder %s1511_s6, %s1298_s28  ;;  %p1307_p0 = scmp.lt.s32.totalorder %s1298_s28, %s1298_s28 }
  0x35   : > { %p1301_p7 = pnand %p1299_p5, %p1259_p13  ;;  %p1308_p2 = por %p1307_p0, %p1306_p12 }
  0x37   : > { %p1302_p9 = pneg %p1301_p7 }
  0x39   : > { %p1309_p1 = pnand %p1308_p2, %p1302_p9 }
  0x3b   : > { %1312 = shalt.err (!%p1309_p1)
}
  0x3c   : > { %s1419_s12 = smov 64   ;;  %s1420_s13 = smov 4  }
  0x3d   : > { %1121 = dma.hbm_to_vmem [thread:$0]  (!%p1507_p11), %s1797_s3, 2048, %s1511_s6, [#allocation6], %s1419_s12, %s1419_s12, %s1420_s13  }
  0x3e   : > { %s1569_s16 = sadd.s32 1, %s1413_s21   ;;  %s29_s23 = sadd.s32 1, %s1409_s20 }
  0x3f   : > { %s26_s17 = ssub.s32 %s1413_s21, %s1569_s16  ;;  %p36_p6 = scmp.ne.s32.totalorder %s1409_s20, %s1405_s19 }
  0x40   : > { %p27_p13 = scmp.eq.s32.totalorder %s26_s17, 0  ;;  %p37_p10 = scmp.eq.s32.totalorder %s1413_s21, 0 }
  0x41   : > { %p1807_p5 = scmp.eq.s32.totalorder %s1477_s22, 1  ;;  %p1132_p9 = scmp.lt.s32.totalorder %s1413_s21, 2 }
  0x42   : > { %s1578_s27 = scalar_select %p27_p13, %s1409_s20, %s29_s23  }
  0x43   : > { %p38_p3 = por %p37_p10, %p36_p6  ;;  %p1582_p7 = por %p1807_p5, %p36_p6 }
  0x44   : > { %s208_s30 = sand.u32 1, %s1409_s20   ;;  %s1037_s6 = sshll.u32 %s1413_s21, 10 }
  0x45   : > { %s1808_s29 = scalar_select %p1582_p7, 1, 0 }
  0x46   : > { %s983_s7 = sshll.u32 %s208_s30, 6  ;;  %s1592_s10 = scalar_lea.hbm %s1794_s0, %s1037_s6 }
  0x47   : > { %s212_s11 = scalar_lea.vmem [#allocation2], %s983_s7  ;;  %p1596_p11 = pnand %p1132_p9, %p38_p3 }
  0x48   : > { %s219_s28 = sshll.u32 %s212_s11, 4  ;;  %s1600_s15 = scalar_lea.sflag [#allocation3], %s208_s30  ;;  %s1594_s28 = int_to_ptr.vmem [resolvable:$true] %s219_s28 }
  0x49   : > { %s1313_s17 = scalar_lea.hbm %s1592_s10, 1024  ;;  %p1315_p0 = pneg %p1596_p11 }
  0x4a   : > { %p1314_p12 = scmp.ne.s32.totalorder %s1592_s10, %s1313_s17  ;;  %s1318_s6 = scalar_lea.hbm %s1794_s0, 2048 }
  0x4b   : > { %p1319_p13 = scmp.lt.u32.totalorder %s1592_s10, %s1794_s0  ;;  %p1320_p6 = scmp.lt.u32.totalorder %s1318_s6, %s1313_s17 }
  0x4c   : > { %p1316_p2 = pnand %p1315_p0, %p1314_p12  ;;  %p1322_p3 = scmp.lt.u32.totalorder %s1313_s17, %s1592_s10 }
  0x4d   : > { %p1321_p10 = por %p1320_p6, %p1319_p13 }
  0x4e   : > { %p1317_p1 = pneg %p1316_p2 }
  0x4f   : > { %p1323_p5 = por %p1322_p3, %p1321_p10 }
  0x51   : > { %p1324_p9 = pnand %p1323_p5, %p1317_p1 }
  0x53   : > { %1327 = shalt.err (!%p1324_p9)
}
  0x54   : > { %s1328_s30 = scalar_lea.vmem %s1594_s28, 1024  ;;  %s1421_s11 = smov [#allocation2]  }
  0x55   : > { %p1329_p12 = scmp.ne.s32.totalorder %s1594_s28, %s1328_s30  ;;  %s1333_s23 = sshll.u32 %s1421_s11, 4  ;;  %s1334_s23 = int_to_ptr.vmem [resolvable:$false] %s1333_s23 }
  0x56   : > { %s1335_s7 = scalar_lea.vmem %s1334_s23, 2048  ;;  %p1336_p4 = scmp.lt.s32.totalorder %s1594_s28, %s1334_s23 }
  0x57   : > { %p1331_p2 = pnand %p1329_p12, %p1315_p0  ;;  %p1337_p13 = scmp.lt.s32.totalorder %s1335_s7, %s1328_s30 }
  0x59   : > { %p1332_p7 = pneg %p1331_p2  ;;  %p1338_p6 = por %p1337_p13, %p1336_p4 }
  0x5b   : > { %p1339_p10 = pnand %p1338_p6, %p1332_p7 }
  0x5d   : > { %1342 = shalt.err (!%p1339_p10)
}
  0x5e   : > { %1125 = dma.hbm_to_vmem [thread:$0]  (!%p1596_p11), %s1592_s10, 1024, %s1594_s28, %s1600_s15, %s1419_s12, %s1419_s12, %s1420_s13  }
  0x5f   : > { %231 = sbr.rel (%p1496_p8) target bundleno = 662 (0x296), region = 40  ;;  %s1634_s17 = sand.u32 (!%p1496_p8), 1, %s1405_s19  }
  0x60   : > { %s987_s6 = sshll.u32 (!%p1496_p8), %s1634_s17, 6  ;;  %s234_s8 = scalar_lea.sflag (!%p1496_p8), [#allocation3], %s1634_s17 }
  0x61   : > { %s1638_s9 = scalar_lea.vmem (!%p1496_p8), [#allocation2], %s987_s6  ;;  %p1810_p4 = scmp.ne.s32.totalorder (!%p1496_p8), %s1803_s24, 0 }
  0x66   : > { %1388 = dma.done.wait (%p1810_p4), %s234_s8, 1024  }
  0x67   : > { %1390 = vsyncadd (%p1810_p4), %s234_s8, 4294966272  ;;  %p1811_p7 = scmp.eq.s32.totalorder %s1477_s22, 0 }
  0x69   : > { %1392 = dma.done.wait (%p1811_p7), [#allocation6], 4096   ;;  %p1812_p8 = pmov %p1811_p7 }
  0x6a   : > { %v1422_v0 = vmov 0   ;;  %v1177_v1 = vld [vmem:[#allocation5 + $0x4] ss:$8 sps:$4 sm:$0xff]   ;;  %v1179_v2 = vld [vmem:[#allocation5] ss:$8 sps:$4 sm:$0xff]   ;;  %v1213_v19 = vld [vmem:[#allocation7 + $0x50] sm:$0xff]   ;;  %v309_v41 = vlaneseq }
  0x6b   : > { %1394 = vsyncadd (%p1812_p8), [#allocation6], 4294963200  ;;  %479 = vmatprep.mubr.bf16.mxu0 %v1422_v0  ;;  %447 = vmatprep.subr.bf16.mxu0 %v1177_v1  ;;  %v1180_v3 = vld [vmem:[#allocation5 + $0x14] ss:$8 sps:$4 sm:$0xff]   ;;  %v1182_v4 = vld [vmem:[#allocation5 + $0x10] ss:$8 sps:$4 sm:$0xff]  }
  0x6c   : > { %448 = vmatpush1.bf16.msra.mxu0 %v1179_v2  ;;  %v1183_v5 = vld [vmem:[#allocation5 + $0x24] ss:$8 sps:$4 sm:$0xff]   ;;  %v1185_v6 = vld [vmem:[#allocation5 + $0x20] ss:$8 sps:$4 sm:$0xff]   ;;  %v1186_v7 = vld [vmem:[#allocation5 + $0x34] ss:$8 sps:$4 sm:$0xff]  }
  0x6d   : > { %449 = vmatprep.subr.bf16.mxu0 %v1180_v3  ;;  %v1188_v8 = vld [vmem:[#allocation5 + $0x30] ss:$8 sps:$4 sm:$0xff]   ;;  %v1189_v9 = vld [vmem:[#allocation5 + $0x44] ss:$8 sps:$4 sm:$0xff]   ;;  %v1191_v10 = vld [vmem:[#allocation5 + $0x40] ss:$8 sps:$4 sm:$0xff]  }
  0x6e   : > { %v1192_v11 = vld [vmem:[#allocation5 + $0x54] ss:$8 sps:$4 sm:$0xff]   ;;  %v1194_v12 = vld [vmem:[#allocation5 + $0x50] ss:$8 sps:$4 sm:$0xff]   ;;  %v1195_v13 = vld [vmem:[#allocation5 + $0x64] ss:$8 sps:$4 sm:$0xff]  }
  0x6f   : > { %v1209_v14 = vld [vmem:[#allocation7 + $0x40] sm:$0xff]   ;;  %v1211_v17 = vld [vmem:[#allocation7 + $0x48] sm:$0xff]   ;;  %v1198_v20 = vld [vmem:[#allocation5 + $0x74] ss:$8 sps:$4 sm:$0xff]   ;;  %v310_v42 = vshrl.u32 %v309_v41, 7  ;;  %s990_s10 = sshll.u32 %s1634_s17, 7 }
  0x70   : > { %450 = vmatpush1.bf16.msra.mxu0 %v1182_v4  ;;  %v1210_v15 = vld [vmem:[#allocation7] sm:$0xff]   ;;  %1039 = vmatprep.subr.bf16.mxu1 %v1209_v14  ;;  %v1212_v18 = vld [vmem:[#allocation7 + $0x8] sm:$0xff]   ;;  %v1200_v21 = vld [vmem:[#allocation5 + $0x70] ss:$8 sps:$4 sm:$0xff]   ;;  %s1713_s28 = scalar_lea.vmem [#allocation8], %s990_s10  ;;  %s1038_s14 = sshll.u32 %s1477_s22, 11 }
  0x71   : > { %451 = vmatprep.subr.bf16.mxu0 %v1183_v5  ;;  %v1197_v16 = vld [vmem:[#allocation5 + $0x60] ss:$8 sps:$4 sm:$0xff]   ;;  %1040 = vmatpush3.bf16.msra.mxu1 %v1210_v15  ;;  %v1214_v22 = vld [vmem:[#allocation7 + $0x10] sm:$0xff]   ;;  %v1215_v23 = vld [vmem:[#allocation7 + $0x58] sm:$0xff]   ;;  %v311_v43 = vsub.s32 0, %v310_v42  ;;  %v315_v45 = vsub.s32 1, %v310_v42  ;;  %s1746_s23 = scalar_lea.hbm %s1799_s5, %s1038_s14 }
  0x72   : > { %1041 = vmatprep.subr.bf16.mxu1 %v1211_v17  ;;  %v1201_v24 = vld [vmem:[%s1638_s9] sm:$0xff]   ;;  %v1216_v25 = vld [vmem:[#allocation7 + $0x18] sm:$0xff]   ;;  %v1219_v28 = vld [vmem:[#allocation7 + $0x68] sm:$0xff]   ;;  %s886_s15 = sshll.u32 %s1713_s28, 4  ;;  %s873_s7 = scalar_lea.sflag [#allocation4], %s1634_s17  ;;  %s1748_s15 = int_to_ptr.vmem [resolvable:$true] %s886_s15 }
  0x73   : > { %v1217_v26 = vld [vmem:[#allocation7 + $0x60] sm:$0xff]   ;;  %v1202_v29 = vld [vmem:[%s1638_s9 + $0x8] sm:$0xff]   ;;  %v1203_v30 = vld [vmem:[%s1638_s9 + $0x10] sm:$0xff]   ;;  %s1343_s6 = scalar_lea.vmem %s1748_s15, 2048  ;;  %p1813_p0 = scmp.ne.s32.totalorder %s1808_s29, 0 }
  0x74   : > { %452 = vmatpush1.bf16.msra.mxu0 %v1185_v6  ;;  %v1218_v27 = vld [vmem:[#allocation7 + $0x20] sm:$0xff]   ;;  %v1204_v31 = vld [vmem:[%s1638_s9 + $0x18] sm:$0xff]   ;;  %v1206_v33 = vld [vmem:[%s1638_s9 + $0x28] sm:$0xff]   ;;  %p1344_p11 = scmp.ne.s32.totalorder %s1748_s15, %s1343_s6  ;;  %s1423_s22 = smov [#allocation8]  }
  0x75   : > { %453 = vmatprep.subr.bf16.mxu0 %v1186_v7  ;;  %1042 = vmatpush3.bf16.msra.mxu1 %v1212_v18  ;;  %v1205_v32 = vld [vmem:[%s1638_s9 + $0x20] sm:$0xff]   ;;  %v1207_v34 = vld [vmem:[%s1638_s9 + $0x30] sm:$0xff]   ;;  %v1208_v35 = vld [vmem:[%s1638_s9 + $0x38] sm:$0xff]   ;;  %s1347_s8 = sshll.u32 %s1423_s22, 4  ;;  %s1348_s8 = int_to_ptr.vmem [resolvable:$false] %s1347_s8 }
  0x76   : > { %1043 = vmatprep.subr.bf16.mxu1 %v1213_v19  ;;  %v1220_v36 = vld [vmem:[#allocation7 + $0x28] sm:$0xff]   ;;  %v1221_v37 = vld [vmem:[#allocation7 + $0x70] sm:$0xff]   ;;  %v1223_v39 = vld [vmem:[#allocation7 + $0x78] sm:$0xff]   ;;  %p1345_p1 = pnand %p1344_p11, %p1813_p0  ;;  %s1349_s9 = scalar_lea.vmem %s1348_s8, 4096 }
  0x77   : > { %v1222_v38 = vld [vmem:[#allocation7 + $0x30] sm:$0xff]   ;;  %v1224_v40 = vld [vmem:[#allocation7 + $0x38] sm:$0xff]   ;;  %v307_v44 = vld [vmem:[%s1796_s2] sm:$0x3]  ;;  %p1350_p5 = scmp.lt.s32.totalorder %s1748_s15, %s1348_s8  ;;  %p1351_p9 = scmp.lt.s32.totalorder %s1349_s9, %s1343_s6 }
  0x78   : > { %454 = vmatpush1.bf16.msra.mxu0 %v1188_v8  ;;  %v1667_v46 = vrot.slane %v307_v44, %v311_v43  ;;  %v1669_v47 = vrot.slane %v307_v44, %v315_v45  ;;  %p1346_p3 = pneg %p1345_p1 }
  0x79   : > { %455 = vmatprep.subr.bf16.mxu0 %v1189_v9  ;;  %1044 = vmatpush3.bf16.msra.mxu1 %v1214_v22  ;;  %p1352_p12 = por %p1351_p9, %p1350_p5 }
  0x7a   : > { %1045 = vmatprep.subr.bf16.mxu1 %v1215_v23 }
  0x7b   : > { %p1353_p2 = pnand %p1352_p12, %p1346_p3 }
  0x7c   : > { %456 = vmatpush1.bf16.msra.mxu0 %v1191_v10 }
  0x7d   : > { %457 = vmatprep.subr.bf16.mxu0 %v1192_v11  ;;  %1046 = vmatpush3.bf16.msra.mxu1 %v1216_v25 }
  0x7e   : > { %1047 = vmatprep.subr.bf16.mxu1 %v1217_v26 }
  0x80   : > { %458 = vmatpush1.bf16.msra.mxu0 %v1194_v12 }
  0x81   : > { %459 = vmatprep.subr.bf16.mxu0 %v1195_v13  ;;  %1048 = vmatpush3.bf16.msra.mxu1 %v1218_v27 }
  0x82   : > { %1049 = vmatprep.subr.bf16.mxu1 %v1219_v28 }
  0x84   : > { %460 = vmatpush1.bf16.msra.mxu0 %v1197_v16 }
  0x85   : > { %461 = vmatprep.subr.bf16.mxu0 %v1198_v20  ;;  %1050 = vmatpush3.bf16.msra.mxu1 %v1220_v36 }
  0x86   : > { %1051 = vmatprep.subr.bf16.mxu1 %v1221_v37 }
  0x88   : > { %462 = vmatpush1.bf16.msra.mxu0 %v1200_v21 }
  0x89   : > { %1052 = vmatpush3.bf16.msra.mxu1 %v1222_v38 }
  0x8a   : > { %1053 = vmatprep.subr.bf16.mxu1 %v1223_v39 }
  0x8b   : > { %480 = vmatmul.mubr.bf16.vlgmr.msra.gmra.mrb[0].mxu0 %v1201_v24 }
  0x8c   : > { %489 = vmatprep.mubr.bf16.mxu0 %v1422_v0 }
  0x8d   : > { %1054 = vmatpush3.bf16.msra.mxu1 %v1224_v40 }
  0x93   : > { %490 = vmatmul.mubr.bf16.gmra.mrb[4].mxu0 %v1202_v29 }
  0x94   : > { %499 = vmatprep.mubr.bf16.mxu0 %v1422_v0 }
  0x9b   : > { %500 = vmatmul.mubr.bf16.gmra.mrb[8].mxu0 %v1203_v30 }
  0x9c   : > { %509 = vmatprep.mubr.bf16.mxu0 %v1422_v0 }
  0xa3   : > { %510 = vmatmul.mubr.bf16.gmra.mrb[12].mxu0 %v1204_v31 }
  0xa4   : > { %519 = vmatprep.mubr.bf16.mxu0 %v1422_v0 }
  0xab   : > { %520 = vmatmul.mubr.bf16.gmra.mrb[16].mxu0 %v1205_v32 }
  0xac   : > { %529 = vmatprep.mubr.bf16.mxu0 %v1422_v0 }
  0xb3   : > { %530 = vmatmul.mubr.bf16.gmra.mrb[20].mxu0 %v1206_v33 }
  0xb4   : > { %539 = vmatprep.mubr.bf16.mxu0 %v1422_v0 }
  0xbb   : > { %540 = vmatmul.mubr.bf16.gmra.mrb[24].mxu0 %v1207_v34 }
  0xbc   : > { %549 = vmatprep.mubr.bf16.mxu0 %v1422_v0 }
  0xc3   : > { %550 = vmatmul.mubr.bf16.gmra.mrb[28].mxu0 %v1208_v35 }
 0x15e   : > { %v481_v48 = vpop.f32.mrb[0].mxu0 }
 0x15f   : > { %v482_v49 = vadd.f32 %v481_v48, %v1667_v46  ;;  %v483_v50 = vpop.f32.mrb[1].mxu0 }
 0x160   : > { %v484_v51 = vadd.f32 %v483_v50, %v1669_v47  ;;  %v485_v52 = vpop.f32.mrb[2].mxu0 }
 0x161   : > { %v486_v53 = vadd.f32 %v485_v52, %v1667_v46  ;;  %v487_v54 = vpop.f32.mrb[3].mxu0  ;;  %v560_v56 = vmax.f32 %v482_v49, 0.0 }
 0x162   : > { %v488_v55 = vadd.f32 %v487_v54, %v1669_v47  ;;  %v561_v58 = vmax.f32 %v484_v51, 0.0 }
 0x163   : > { %v562_v57 = vmax.f32 %v486_v53, 0.0 }
 0x164   : > { %v563_v59 = vmax.f32 %v488_v55, 0.0 }
 0x165   : > { %v592_v60 = vpack.c.bf16 %v562_v57, %v560_v56 }
 0x166   : > { %v491_v61 = vpop.f32.mrb[4].mxu0  ;;  %v593_v62 = vpack.c.bf16 %v563_v59, %v561_v58 }
 0x167   : > { %v492_v63 = vadd.f32 %v491_v61, %v1667_v46  ;;  %v493_v0 = vpop.f32.mrb[5].mxu0 }
 0x168   : > { %v494_v1 = vadd.f32 %v493_v0, %v1669_v47  ;;  %v495_v2 = vpop.f32.mrb[6].mxu0  ;;  %775 = vmatprep.mubr.bf16.mxu1 %v593_v62 }
 0x169   : > { %v496_v3 = vadd.f32 %v495_v2, %v1667_v46  ;;  %v497_v4 = vpop.f32.mrb[7].mxu0  ;;  %776 = vmatmul.mubr.bf16.vlgmr.msra.gmra.mrb[0].mxu1 %v592_v60  ;;  %v564_v6 = vmax.f32 %v492_v63, 0.0 }
 0x16a   : > { %v498_v5 = vadd.f32 %v497_v4, %v1669_v47  ;;  %v565_v8 = vmax.f32 %v494_v1, 0.0 }
 0x16b   : > { %v566_v7 = vmax.f32 %v496_v3, 0.0 }
 0x16c   : > { %v567_v9 = vmax.f32 %v498_v5, 0.0 }
 0x16d   : > { %v594_v10 = vpack.c.bf16 %v566_v7, %v564_v6 }
 0x16e   : > { %v595_v11 = vpack.c.bf16 %v567_v9, %v565_v8  ;;  %v501_v12 = vpop.f32.mrb[8].mxu0 }
 0x16f   : > { %v502_v13 = vadd.f32 %v501_v12, %v1667_v46  ;;  %v503_v14 = vpop.f32.mrb[9].mxu0 }
 0x170   : > { %v504_v15 = vadd.f32 %v503_v14, %v1669_v47  ;;  %v505_v16 = vpop.f32.mrb[10].mxu0  ;;  %783 = vmatprep.mubr.bf16.mxu1 %v595_v11 }
 0x171   : > { %v506_v17 = vadd.f32 %v505_v16, %v1667_v46  ;;  %v507_v18 = vpop.f32.mrb[11].mxu0  ;;  %784 = vmatmul.mubr.bf16.gmra.mrb[4].mxu1 %v594_v10  ;;  %v568_v20 = vmax.f32 %v502_v13, 0.0 }
 0x172   : > { %v508_v19 = vadd.f32 %v507_v18, %v1669_v47  ;;  %v569_v22 = vmax.f32 %v504_v15, 0.0 }
 0x173   : > { %v570_v21 = vmax.f32 %v506_v17, 0.0 }
 0x174   : > { %v571_v23 = vmax.f32 %v508_v19, 0.0 }
 0x175   : > { %v596_v24 = vpack.c.bf16 %v570_v21, %v568_v20 }
 0x176   : > { %v597_v25 = vpack.c.bf16 %v571_v23, %v569_v22  ;;  %v511_v26 = vpop.f32.mrb[12].mxu0 }
 0x177   : > { %v512_v27 = vadd.f32 %v511_v26, %v1667_v46  ;;  %v513_v28 = vpop.f32.mrb[13].mxu0 }
 0x178   : > { %v514_v29 = vadd.f32 %v513_v28, %v1669_v47  ;;  %v515_v30 = vpop.f32.mrb[14].mxu0  ;;  %791 = vmatprep.mubr.bf16.mxu1 %v597_v25 }
 0x179   : > { %v516_v31 = vadd.f32 %v515_v30, %v1667_v46  ;;  %v517_v32 = vpop.f32.mrb[15].mxu0  ;;  %792 = vmatmul.mubr.bf16.gmra.mrb[8].mxu1 %v596_v24  ;;  %v572_v34 = vmax.f32 %v512_v27, 0.0 }
 0x17a   : > { %v518_v33 = vadd.f32 %v517_v32, %v1669_v47  ;;  %v573_v36 = vmax.f32 %v514_v29, 0.0 }
 0x17b   : > { %v574_v35 = vmax.f32 %v516_v31, 0.0 }
 0x17c   : > { %v575_v37 = vmax.f32 %v518_v33, 0.0 }
 0x17d   : > { %v598_v38 = vpack.c.bf16 %v574_v35, %v572_v34  ;;  %v1706_v35 = vld [vmem:[%s1798_s4] ss:$0 sm:$0xff] }
 0x17e   : > { %v599_v39 = vpack.c.bf16 %v575_v37, %v573_v36  ;;  %v521_v40 = vpop.f32.mrb[16].mxu0 }
 0x17f   : > { %v522_v41 = vadd.f32 %v521_v40, %v1667_v46  ;;  %v523_v42 = vpop.f32.mrb[17].mxu0 }
 0x180   : > { %v524_v43 = vadd.f32 %v523_v42, %v1669_v47  ;;  %v525_v44 = vpop.f32.mrb[18].mxu0  ;;  %799 = vmatprep.mubr.bf16.mxu1 %v599_v39 }
 0x181   : > { %v526_v45 = vadd.f32 %v525_v44, %v1667_v46  ;;  %v527_v48 = vpop.f32.mrb[19].mxu0  ;;  %800 = vmatmul.mubr.bf16.gmra.mrb[12].mxu1 %v598_v38  ;;  %v576_v50 = vmax.f32 %v522_v41, 0.0 }
 0x182   : > { %v528_v49 = vadd.f32 %v527_v48, %v1669_v47  ;;  %v577_v52 = vmax.f32 %v524_v43, 0.0 }
 0x183   : > { %v578_v51 = vmax.f32 %v526_v45, 0.0 }
 0x184   : > { %v579_v53 = vmax.f32 %v528_v49, 0.0 }
 0x185   : > { %v600_v54 = vpack.c.bf16 %v578_v51, %v576_v50 }
 0x186   : > { %v601_v55 = vpack.c.bf16 %v579_v53, %v577_v52  ;;  %v531_v56 = vpop.f32.mrb[20].mxu0 }
 0x187   : > { %v532_v57 = vadd.f32 %v531_v56, %v1667_v46  ;;  %v533_v58 = vpop.f32.mrb[21].mxu0 }
 0x188   : > { %v534_v59 = vadd.f32 %v533_v58, %v1669_v47  ;;  %v535_v60 = vpop.f32.mrb[22].mxu0  ;;  %807 = vmatprep.mubr.bf16.mxu1 %v601_v55 }
 0x189   : > { %v536_v61 = vadd.f32 %v535_v60, %v1667_v46  ;;  %v537_v62 = vpop.f32.mrb[23].mxu0  ;;  %808 = vmatmul.mubr.bf16.gmra.mrb[16].mxu1 %v600_v54  ;;  %v580_v0 = vmax.f32 %v532_v57, 0.0 }
 0x18a   : > { %v538_v63 = vadd.f32 %v537_v62, %v1669_v47  ;;  %v581_v2 = vmax.f32 %v534_v59, 0.0 }
 0x18b   : > { %v582_v1 = vmax.f32 %v536_v61, 0.0 }
 0x18c   : > { %v583_v3 = vmax.f32 %v538_v63, 0.0 }
 0x18d   : > { %v602_v4 = vpack.c.bf16 %v582_v1, %v580_v0 }
 0x18e   : > { %v603_v5 = vpack.c.bf16 %v583_v3, %v581_v2  ;;  %v541_v6 = vpop.f32.mrb[24].mxu0 }
 0x18f   : > { %v542_v7 = vadd.f32 %v541_v6, %v1667_v46  ;;  %v543_v8 = vpop.f32.mrb[25].mxu0 }
 0x190   : > { %v544_v9 = vadd.f32 %v543_v8, %v1669_v47  ;;  %v545_v10 = vpop.f32.mrb[26].mxu0  ;;  %815 = vmatprep.mubr.bf16.mxu1 %v603_v5 }
 0x191   : > { %v546_v11 = vadd.f32 %v545_v10, %v1667_v46  ;;  %v547_v12 = vpop.f32.mrb[27].mxu0  ;;  %816 = vmatmul.mubr.bf16.gmra.mrb[20].mxu1 %v602_v4  ;;  %v584_v14 = vmax.f32 %v542_v7, 0.0 }
 0x192   : > { %v548_v13 = vadd.f32 %v547_v12, %v1669_v47  ;;  %v585_v16 = vmax.f32 %v544_v9, 0.0 }
 0x193   : > { %v586_v15 = vmax.f32 %v546_v11, 0.0 }
 0x194   : > { %v587_v17 = vmax.f32 %v548_v13, 0.0 }
 0x195   : > { %v604_v18 = vpack.c.bf16 %v586_v15, %v584_v14 }
 0x196   : > { %v605_v19 = vpack.c.bf16 %v587_v17, %v585_v16  ;;  %v551_v20 = vpop.f32.mrb[28].mxu0 }
 0x197   : > { %v552_v21 = vadd.f32 %v551_v20, %v1667_v46  ;;  %v553_v22 = vpop.f32.mrb[29].mxu0 }
 0x198   : > { %v554_v23 = vadd.f32 %v553_v22, %v1669_v47  ;;  %v555_v24 = vpop.f32.mrb[30].mxu0  ;;  %823 = vmatprep.mubr.bf16.mxu1 %v605_v19 }
 0x199   : > { %v556_v25 = vadd.f32 %v555_v24, %v1667_v46  ;;  %v557_v26 = vpop.f32.mrb[31].mxu0  ;;  %824 = vmatmul.mubr.bf16.gmra.mrb[24].mxu1 %v604_v18  ;;  %v588_v28 = vmax.f32 %v552_v21, 0.0 }
 0x19a   : > { %v558_v27 = vadd.f32 %v557_v26, %v1669_v47  ;;  %v589_v30 = vmax.f32 %v554_v23, 0.0 }
 0x19b   : > { %v590_v29 = vmax.f32 %v556_v25, 0.0 }
 0x19c   : > { %v591_v31 = vmax.f32 %v558_v27, 0.0 }
 0x19d   : > { %v606_v32 = vpack.c.bf16 %v590_v29, %v588_v28 }
 0x19e   : > { %v607_v33 = vpack.c.bf16 %v591_v31, %v589_v30 }
 0x1a0   : > { %831 = vmatprep.mubr.bf16.mxu1 %v607_v33 }
 0x1a1   : > { %832 = vmatmul.mubr.bf16.gmra.mrb[28].mxu1 %v606_v32 }
 0x23c   : > { %v1055_v34 = vpop.f32.mrb[0].mxu1 }
 0x23d   : > { %v1056_v46 = vpop.f32.mrb[1].mxu1 }
 0x23e   : > { %v1057_v36 = vadd.f32 %v1056_v46, %v1055_v34  ;;  %v1058_v37 = vpop.f32.mrb[2].mxu1 }
 0x23f   : > { %v1059_v38 = vpop.f32.mrb[3].mxu1 }
 0x240   : > { %v778_v47 = vadd.f32 %v1057_v36, %v1706_v35  ;;  %v1060_v39 = vadd.f32 %v1059_v38, %v1058_v37 }
 0x242   : > { %1225 = vtanh.f32 %v778_v47  ;;  %v781_v40 = vadd.f32 %v1060_v39, %v1706_v35 }
 0x244   : > { %1227 = vtanh.f32 %v781_v40  ;;  %v1061_v41 = vpop.f32.mrb[4].mxu1 }
 0x245   : > { %v1062_v42 = vpop.f32.mrb[5].mxu1 }
 0x246   : > { %v1063_v43 = vadd.f32 %v1062_v42, %v1061_v41  ;;  %v1064_v44 = vpop.f32.mrb[6].mxu1 }
 0x247   : > { %v1065_v45 = vpop.f32.mrb[7].mxu1 }
 0x248   : > { %v786_v48 = vadd.f32 %v1063_v43, %v1706_v35  ;;  %v1066_v49 = vadd.f32 %v1065_v45, %v1064_v44 }
 0x24a   : > { %1229 = vtanh.f32 %v786_v48  ;;  %v789_v50 = vadd.f32 %v1066_v49, %v1706_v35 }
 0x24c   : > { %v1226_v51 = vpop.eup %1225  ;;  %1231 = vtanh.f32 %v789_v50  ;;  %v1067_v52 = vpop.f32.mrb[8].mxu1 }
 0x24d   : > { %856 = vst [vmem:[%s1713_s28] sm:$0xff] %v1226_v51  ;;  %v1068_v53 = vpop.f32.mrb[9].mxu1 }
 0x24e   : > { %v1228_v54 = vpop.eup %1227  ;;  %v1069_v55 = vadd.f32 %v1068_v53, %v1067_v52  ;;  %v1070_v56 = vpop.f32.mrb[10].mxu1 }
 0x24f   : > { %857 = vst [vmem:[%s1713_s28 + $0x8] sm:$0xff] %v1228_v54  ;;  %v1071_v57 = vpop.f32.mrb[11].mxu1 }
 0x250   : > { %v794_v58 = vadd.f32 %v1069_v55, %v1706_v35  ;;  %v1072_v59 = vadd.f32 %v1071_v57, %v1070_v56 }
 0x252   : > { %1233 = vtanh.f32 %v794_v58  ;;  %v797_v60 = vadd.f32 %v1072_v59, %v1706_v35 }
 0x254   : > { %v1230_v61 = vpop.eup %1229  ;;  %1235 = vtanh.f32 %v797_v60  ;;  %v1073_v62 = vpop.f32.mrb[12].mxu1 }
 0x255   : > { %858 = vst [vmem:[%s1713_s28 + $0x10] sm:$0xff] %v1230_v61  ;;  %v1074_v63 = vpop.f32.mrb[13].mxu1 }
 0x256   : > { %v1232_v0 = vpop.eup %1231  ;;  %v1075_v1 = vadd.f32 %v1074_v63, %v1073_v62  ;;  %v1076_v2 = vpop.f32.mrb[14].mxu1 }
 0x257   : > { %859 = vst [vmem:[%s1713_s28 + $0x18] sm:$0xff] %v1232_v0  ;;  %v1077_v3 = vpop.f32.mrb[15].mxu1 }
 0x258   : > { %v802_v4 = vadd.f32 %v1075_v1, %v1706_v35  ;;  %v1078_v5 = vadd.f32 %v1077_v3, %v1076_v2 }
 0x25a   : > { %1237 = vtanh.f32 %v802_v4  ;;  %v805_v6 = vadd.f32 %v1078_v5, %v1706_v35 }
 0x25c   : > { %v1234_v7 = vpop.eup %1233  ;;  %1239 = vtanh.f32 %v805_v6  ;;  %v1079_v8 = vpop.f32.mrb[16].mxu1 }
 0x25d   : > { %860 = vst [vmem:[%s1713_s28 + $0x20] sm:$0xff] %v1234_v7  ;;  %v1080_v9 = vpop.f32.mrb[17].mxu1 }
 0x25e   : > { %v1236_v10 = vpop.eup %1235  ;;  %v1081_v11 = vadd.f32 %v1080_v9, %v1079_v8  ;;  %v1082_v12 = vpop.f32.mrb[18].mxu1 }
 0x25f   : > { %861 = vst [vmem:[%s1713_s28 + $0x28] sm:$0xff] %v1236_v10  ;;  %v1083_v13 = vpop.f32.mrb[19].mxu1 }
 0x260   : > { %v810_v14 = vadd.f32 %v1081_v11, %v1706_v35  ;;  %v1084_v15 = vadd.f32 %v1083_v13, %v1082_v12 }
 0x262   : > { %1241 = vtanh.f32 %v810_v14  ;;  %v813_v16 = vadd.f32 %v1084_v15, %v1706_v35 }
 0x264   : > { %v1238_v17 = vpop.eup %1237  ;;  %1243 = vtanh.f32 %v813_v16  ;;  %v1085_v18 = vpop.f32.mrb[20].mxu1 }
 0x265   : > { %862 = vst [vmem:[%s1713_s28 + $0x30] sm:$0xff] %v1238_v17  ;;  %v1086_v19 = vpop.f32.mrb[21].mxu1 }
 0x266   : > { %v1240_v20 = vpop.eup %1239  ;;  %v1087_v21 = vadd.f32 %v1086_v19, %v1085_v18  ;;  %v1088_v22 = vpop.f32.mrb[22].mxu1 }
 0x267   : > { %863 = vst [vmem:[%s1713_s28 + $0x38] sm:$0xff] %v1240_v20  ;;  %v1089_v23 = vpop.f32.mrb[23].mxu1 }
 0x268   : > { %v818_v24 = vadd.f32 %v1087_v21, %v1706_v35  ;;  %v1090_v25 = vadd.f32 %v1089_v23, %v1088_v22 }
 0x26a   : > { %1245 = vtanh.f32 %v818_v24  ;;  %v821_v26 = vadd.f32 %v1090_v25, %v1706_v35 }
 0x26c   : > { %v1242_v27 = vpop.eup %1241  ;;  %1247 = vtanh.f32 %v821_v26  ;;  %v1091_v28 = vpop.f32.mrb[24].mxu1 }
 0x26d   : > { %864 = vst [vmem:[%s1713_s28 + $0x40] sm:$0xff] %v1242_v27  ;;  %v1092_v29 = vpop.f32.mrb[25].mxu1 }
 0x26e   : > { %v1244_v30 = vpop.eup %1243  ;;  %v1093_v31 = vadd.f32 %v1092_v29, %v1091_v28  ;;  %v1094_v32 = vpop.f32.mrb[26].mxu1 }
 0x26f   : > { %865 = vst [vmem:[%s1713_s28 + $0x48] sm:$0xff] %v1244_v30  ;;  %v1095_v33 = vpop.f32.mrb[27].mxu1 }
 0x270   : > { %v826_v34 = vadd.f32 %v1093_v31, %v1706_v35  ;;  %v1096_v46 = vadd.f32 %v1095_v33, %v1094_v32 }
 0x272   : > { %1249 = vtanh.f32 %v826_v34  ;;  %v829_v36 = vadd.f32 %v1096_v46, %v1706_v35 }
 0x274   : > { %v1246_v37 = vpop.eup %1245  ;;  %1251 = vtanh.f32 %v829_v36  ;;  %v1097_v38 = vpop.f32.mrb[28].mxu1 }
 0x275   : > { %866 = vst [vmem:[%s1713_s28 + $0x50] sm:$0xff] %v1246_v37  ;;  %v1098_v47 = vpop.f32.mrb[29].mxu1 }
 0x276   : > { %v1248_v39 = vpop.eup %1247  ;;  %v1099_v40 = vadd.f32 %v1098_v47, %v1097_v38  ;;  %v1100_v41 = vpop.f32.mrb[30].mxu1 }
 0x277   : > { %867 = vst [vmem:[%s1713_s28 + $0x58] sm:$0xff] %v1248_v39  ;;  %v1101_v42 = vpop.f32.mrb[31].mxu1 }
 0x278   : > { %v834_v43 = vadd.f32 %v1099_v40, %v1706_v35  ;;  %v1102_v44 = vadd.f32 %v1101_v42, %v1100_v41 }
 0x27a   : > { %1253 = vtanh.f32 %v834_v43  ;;  %v837_v45 = vadd.f32 %v1102_v44, %v1706_v35 }
 0x27c   : > { %v1250_v48 = vpop.eup %1249  ;;  %1255 = vtanh.f32 %v837_v45 }
 0x27d   : > { %868 = vst [vmem:[%s1713_s28 + $0x60] sm:$0xff] %v1250_v48 }
 0x27e   : > { %v1252_v49 = vpop.eup %1251 }
 0x27f   : > { %869 = vst [vmem:[%s1713_s28 + $0x68] sm:$0xff] %v1252_v49 }
 0x284   : > { %v1254_v50 = vpop.eup %1253 }
 0x285   : > { %870 = vst [vmem:[%s1713_s28 + $0x70] sm:$0xff] %v1254_v50 }
 0x286   : > { %v1256_v35 = vpop.eup %1255 }
 0x287   : > { %871 = vst [vmem:[%s1713_s28 + $0x78] sm:$0xff] %v1256_v35 }
 0x288   : > { %1356 = shalt.err (!%p1353_p2)
}
 0x289   : > { %s1357_s24 = scalar_lea.hbm %s1746_s23, 2048  ;;  %s1361_s13 = scalar_lea.hbm %s1799_s5, 4096 }
 0x28a   : > { %p1358_p13 = scmp.ne.s32.totalorder %s1746_s23, %s1357_s24  ;;  %p1362_p4 = scmp.lt.u32.totalorder %s1746_s23, %s1799_s5 }
 0x28b   : > { %p1363_p7 = scmp.lt.u32.totalorder %s1361_s13, %s1357_s24  ;;  %p1365_p11 = scmp.lt.u32.totalorder %s1357_s24, %s1746_s23 }
 0x28c   : > { %p1359_p6 = pnand %p1358_p13, %p1813_p0 }
 0x28d   : > { %p1364_p8 = por %p1363_p7, %p1362_p4 }
 0x28e   : > { %p1360_p10 = pneg %p1359_p6 }
 0x28f   : > { %p1366_p1 = por %p1365_p11, %p1364_p8 }
 0x291   : > { %p1367_p3 = pnand %p1366_p1, %p1360_p10 }
 0x293   : > { %1370 = shalt.err (!%p1367_p3)
}
 0x294   : > { %s1424_s14 = smov 128   ;;  %s1425_s30 = smov 8  }
 0x295   : > { %1113 = dma.vmem_to_hbm [thread:$0]  (%p1813_p0), %s1748_s15, 2048, %s1746_s23, %s873_s7, %s1424_s14, %s1424_s14, %s1425_s30  }
 0x296 PF: > { %s901_s11 = sand.u32 1, %s1401_s18   ;;  %p1814_p5 = scmp.ne.s32.totalorder %s1804_s25, 0 }
 0x297   : > { %p1815_p9 = scmp.ge.s32.totalorder %s1413_s21, 2  ;;  %s902_s6 = scalar_lea.sflag [#allocation4], %s901_s11 }
 0x299   : > { %p1127_p12 = pnand %p1815_p9, %p1814_p5 }
 0x29b   : > { %1396 = dma.done.wait (!%p1127_p12), %s902_s6, 2048  }
 0x29c   : > { %1398 = vsyncadd (!%p1127_p12), %s902_s6, 4294965248  ;;  %p19_p2 = scmp.ge.s32.totalorder %s1569_s16, 4   ;;  %s1816_s18 = smov %s1405_s19 }
 0x29d   : > { %s1817_s19 = smov %s1409_s20  ;;  %s1818_s20 = smov %s1578_s27 }
 0x29e   : > { %s1819_s21 = smov %s1569_s16  ;;  %21 = sbr.rel (!%p19_p2) target bundleno = 6 (0x6), region = 93 }
 0x2a5   :  { %907 = vsyncpa [#allocation3], 1 }
 0x2a6   :  { %909 = vsyncpa [#allocation3 + $0x1], 1 }
 0x2a7   :  { %910 = vsyncpa [#allocation6], 1 }
 0x2a8   :  { %911 = vsyncpa [#allocation4], 1 }
 0x2a9   :  { %913 = vsyncpa [#allocation4 + $0x1], 1 }

</bundles_post_ra>
